<compile_context>
chip_gen: v7x
topology: tpu7x:2x2x1
jax: 0.10.0
libtpu: 0.0.40
codegen_flags: <defaults>
</compile_context>

<pallas_src>
import jax
import jax.numpy as jnp
from jax.experimental import pallas as pl
from jax.experimental.pallas import tpu as pltpu


# ----------------------------------------------------------------------------- #
# Fused per-episode kernel: encoder(img) + encoder(img_aug) + emd_forward_1shot
# ----------------------------------------------------------------------------- #
def make_deepemd_kernel(temp_scale):
    def kernel(x_ref, wenc_ref, wcls_ref, bcls_ref, logit_ref, emd_ref):
        # x_ref    : [1, Cin, L]  bf16, L = 2*HW; lanes [0,HW) = img (query),
        #                                      lanes [HW,2HW) = img_aug (proto)
        # wenc_ref : [Cf, Cin]    bf16  encoder 1x1-conv projection (backbone stand-in)
        # wcls_ref : [NC, Cf]     f32   classifier weight
        # bcls_ref : [NC, 1]      f32   classifier bias (column)
        # logit_ref: [1, NC, 1]   f32   logits column for this episode
        # emd_ref  : [1, 1, 1]    f32   emd logit for this episode
        f32 = jnp.float32
        Cf = wenc_ref.shape[0]
        L = x_ref.shape[2]
        HW = L // 2

        # ---- encoder stand-in: 1x1-conv projection + ReLU (bf16 MXU, f32 accum) ----
        x = x_ref[0]                                                     # [Cin, L]
        f = jnp.maximum(jnp.dot(wenc_ref[...], x,
                                preferred_element_type=f32), 0.0)        # [Cf, L] f32

        # ---- branch-selection constants from iota (no 64-lane feature slices) ------
        lane = jax.lax.broadcasted_iota(jnp.int32, (1, L), 1)
        mq = (lane < HW).astype(f32)                   # [1, L] query (img) lanes
        mp = 1.0 - mq                                  # [1, L] proto (img_aug) lanes

        li = jax.lax.broadcasted_iota(jnp.int32, (L, 2), 0)
        ci = jax.lax.broadcasted_iota(jnp.int32, (L, 2), 1)
        pool = jnp.where((li < HW) == (ci == 0),
                         f32(1.0 / HW), f32(0.0))      # [L, 2] per-branch GAP columns

        r2 = jax.lax.broadcasted_iota(jnp.int32, (2, L), 0)
        c2 = jax.lax.broadcasted_iota(jnp.int32, (2, L), 1)
        # gap broadcast-with-swap: query lanes get GAP(proto), proto lanes get GAP(query)
        bcsel = jnp.where((c2 < HW) == (r2 == 1), f32(1.0), f32(0.0))    # [2, L]
        # per-branch lane masks as rows: row0 = query, row1 = proto
        masks = jnp.where((c2 < HW) == (r2 == 0), f32(1.0), f32(0.0))    # [2, L]

        # ---- adaptive_avg_pool2d([1,1]) for BOTH branches in one MXU pass ----------
        gap = jnp.dot(f, pool, preferred_element_type=f32)   # [Cf, 2]: col0=GAP(q), col1=GAP(p)

        # ---- classifier head (img branch): logit1 = Wcls @ GAP(feat1) + b ----------
        logit_ref[0] = (jnp.dot(wcls_ref[...], gap[:, 0:1],
                                preferred_element_type=f32) + bcls_ref[...])  # [NC, 1]

        # ---- normalize_feature (args.norm == 'center'): subtract channel mean ------
        ones_mean = jnp.full((1, Cf), 1.0 / Cf, f32)
        ones_sum = jnp.ones((1, Cf), f32)
        fc = f - jnp.dot(ones_mean, f, preferred_element_type=f32)       # [Cf, L]

        # ---- per-pixel channel norms (F.cosine_similarity, per-norm clamp 1e-8) ----
        inv_n = jax.lax.rsqrt(jnp.maximum(
            jnp.dot(ones_sum, fc * fc, preferred_element_type=f32), 1e-16))   # [1, L]

        # ---- get_weight_vector for BOTH branches in one MXU reduction --------------
        gap_rep = jnp.dot(gap, bcsel, preferred_element_type=f32)        # [Cf, L]
        w = jnp.maximum(jnp.dot(ones_sum, f * gap_rep,
                                preferred_element_type=f32), 0.0) + 0.001     # [1, L]

        # ---- get_emd_distance with product-of-marginals flow, rank-1 factorized ----
        #   sum_ij flow[i,j]*cos_ij
        #     = (sum_i w1[i] n1[i] qc_i) . (sum_j w2[j] n2[j] pc_j) / (s1*s2)
        # TODO(synk): QP/LP optimal-transport flow not translated (see header).
        fcs = (fc * inv_n).astype(jnp.bfloat16)       # unit-norm pixel features [Cf, L]
        lr = (w * masks).astype(jnp.bfloat16)         # [2, L]: row0 = w1|0, row1 = 0|w2
        uv = jax.lax.dot_general(fcs, lr, (((1,), (1,)), ((), ())),
                                 preferred_element_type=f32)              # [Cf, 2] (A @ B^T)
        total = jnp.sum(uv[:, 0:1] * uv[:, 1:2], axis=0, keepdims=True)   # [1, 1]

        s1 = jnp.sum(w * mq, axis=1, keepdims=True)   # [1, 1]
        s2 = jnp.sum(w * mp, axis=1, keepdims=True)
        emd_ref[0] = (total / (s1 * s2)) * temp_scale   # exact divide, off critical path

    return kernel


# ----------------------------------------------------------------------------- #
# DeepEMD.forward  (training path: returns (logit1, emd_logits, target))
# ----------------------------------------------------------------------------- #
def deepemd_forward(img, img_aug, target, params, temperature=12.5):
    B, Cin, H, W = img.shape
    HW = H * W
    L = 2 * HW
    Cf = params["wenc"].shape[0]
    NC = params["wcls"].shape[0]
    temp_scale = float(temperature) / float(HW)     # temperature / num_node

    # Layout plumbing (plain XLA): pack img || img_aug on one 2*HW lane axis, bf16 MXU operands.
    x_all = jnp.concatenate(
        [img.reshape(B, Cin, HW), img_aug.reshape(B, Cin, HW)],
        axis=-1).astype(jnp.bfloat16)                                     # [B, Cin, 2*HW]

    wenc = params["wenc"].astype(jnp.bfloat16)                            # [Cf, Cin]
    wcls = params["wcls"].astype(jnp.float32)                             # [NC, Cf]
    bcls = params["bcls"].reshape(NC, 1).astype(jnp.float32)              # [NC, 1]

    logits3, emd3 = pl.pallas_call(
        make_deepemd_kernel(temp_scale),
        out_shape=(
            jax.ShapeDtypeStruct((B, NC, 1), jnp.float32),
            jax.ShapeDtypeStruct((B, 1, 1), jnp.float32),
        ),
        grid_spec=pltpu.PrefetchScalarGridSpec(
            num_scalar_prefetch=0,
            grid=(B,),                                     # one episode per grid step
            in_specs=[
                pl.BlockSpec((1, Cin, L), lambda b: (b, 0, 0)),   # packed img||img_aug
                pl.BlockSpec((Cf, Cin), lambda b: (0, 0)),        # wenc (resident)
                pl.BlockSpec((NC, Cf), lambda b: (0, 0)),         # wcls (resident)
                pl.BlockSpec((NC, 1), lambda b: (0, 0)),          # bcls (resident)
            ],
            out_specs=[
                pl.BlockSpec((1, NC, 1), lambda b: (b, 0, 0)),    # logits column / episode
                pl.BlockSpec((1, 1, 1), lambda b: (b, 0, 0)),     # emd logit / episode
            ],
        ),
        compiler_params=pltpu.CompilerParams(
            dimension_semantics=("parallel",)),        # megacore-shard the batch on v7x
    )(x_all, wenc, wcls, bcls)

    logit1 = logits3.reshape(B, NC)
    emd_logits = emd3.reshape(B)
    return logit1, emd_logits, target


# ----------------------------------------------------------------------------- #
if __name__ == "__main__":
    key = jax.random.PRNGKey(0)
    k_img, k_aug, k_wenc, k_wcls, k_bcls = jax.random.split(key, 5)

    # small shapes consistent with the forward: batch=2, channels=4, 8x8 spatial
    # (2 * H * W = 128 -> fully lane-dense per-episode packing inside the kernel)
    B, Cin, H, W = 2, 4, 8, 8
    Cf = 32            # encoder feature channels (stand-in for resnet18 layer4)
    NC = 10            # args.num_classes

    img = jax.random.normal(k_img, (B, Cin, H, W), dtype=jnp.float32)
    img_aug = jax.random.normal(k_aug, (B, Cin, H, W), dtype=jnp.float32)
    target = jnp.arange(B, dtype=jnp.int32)

    params = {
        "wenc": 0.1 * jax.random.normal(k_wenc, (Cf, Cin), dtype=jnp.float32),
        "wcls": 0.1 * jax.random.normal(k_wcls, (NC, Cf), dtype=jnp.float32),
        "bcls": 0.01 * jax.random.normal(k_bcls, (1, NC), dtype=jnp.float32),
    }

    logit1, emd_logits, tgt = deepemd_forward(img, img_aug, target, params)
    jax.block_until_ready((logit1, emd_logits, tgt))
    assert logit1.shape == (B, NC)
    assert emd_logits.shape == (B,)
    print("KERNEL_OK")
</pallas_src>

<mosaic_0001>
module attributes {stable_mosaic.version = 11 : i64} {
  func.func @kernel(%arg0: i32, %arg1: memref<1x4x128xbf16, #tpu.memory_space<vmem>>, %arg2: memref<32x4xbf16, #tpu.memory_space<vmem>>, %arg3: memref<10x32xf32, #tpu.memory_space<vmem>>, %arg4: memref<10x1xf32, #tpu.memory_space<vmem>>, %arg5: memref<1x10x1xf32, #tpu.memory_space<vmem>>, %arg6: memref<1x1x1xf32, #tpu.memory_space<vmem>>) attributes {dimension_semantics = [#tpu.dimension_semantics<parallel>], iteration_bounds = array<i64: 2>, scalar_prefetch = 0 : i64, scratch_operands = 0 : i64, tpu.core_type = #tpu.core_type<tc>, window_params = [{transform_indices = @transform_0, window_bounds = array<i64: 1, 4, 128>}, {pipeline_mode = #tpu.pipeline_mode<synchronous>, transform_indices = @transform_1, window_bounds = array<i64: 32, 4>}, {pipeline_mode = #tpu.pipeline_mode<synchronous>, transform_indices = @transform_2, window_bounds = array<i64: 10, 32>}, {pipeline_mode = #tpu.pipeline_mode<synchronous>, transform_indices = @transform_3, window_bounds = array<i64: 10, 1>}, {transform_indices = @transform_4, window_bounds = array<i64: 1, 10, 1>}, {transform_indices = @transform_5, window_bounds = array<i64: 1, 1, 1>}]} {
    %c0 = arith.constant 0 : index
    %c0_0 = arith.constant 0 : index
    %c0_1 = arith.constant 0 : index
    %0 = vector.load %arg1[%c0, %c0_0, %c0_1] : memref<1x4x128xbf16, #tpu.memory_space<vmem>>, vector<1x4x128xbf16>
    %1 = vector.shape_cast %0 : vector<1x4x128xbf16> to vector<4x128xbf16>
    %c0_2 = arith.constant 0 : index
    %c0_3 = arith.constant 0 : index
    %2 = vector.load %arg2[%c0_2, %c0_3] : memref<32x4xbf16, #tpu.memory_space<vmem>>, vector<32x4xbf16>
    %cst = arith.constant dense<0.000000e+00> : vector<32x128xf32>
    %3 = tpu.matmul %2, %1, %cst {dimension_numbers = #tpu.dot_dimension_numbers<[1], [0], [0], [1], [0, 0, 1, 1], [], []>} : vector<32x4xbf16>, vector<4x128xbf16>, vector<32x128xf32> -> vector<32x128xf32>
    %cst_4 = arith.constant 0.000000e+00 : f32
    %4 = vector.broadcast %cst_4 : f32 to vector<32x128xf32>
    %5 = arith.maximumf %3, %4 : vector<32x128xf32>
    %6 = tpu.iota {dimensions = array<i32: 1>} : vector<1x128xi32>
    %c64_i32 = arith.constant 64 : i32
    %7 = vector.broadcast %c64_i32 : i32 to vector<1x128xi32>
    %8 = arith.cmpi slt, %6, %7 : vector<1x128xi32>
    %9 = arith.extui %8 : vector<1x128xi1> to vector<1x128xi32>
    %10 = arith.sitofp %9 : vector<1x128xi32> to vector<1x128xf32>
    %cst_5 = arith.constant 1.000000e+00 : f32
    %11 = vector.broadcast %cst_5 : f32 to vector<1x128xf32>
    %12 = arith.subf %11, %10 : vector<1x128xf32>
    %13 = tpu.iota {dimensions = array<i32: 0>} : vector<128x2xi32>
    %14 = tpu.iota {dimensions = array<i32: 1>} : vector<128x2xi32>
    %c64_i32_6 = arith.constant 64 : i32
    %15 = vector.broadcast %c64_i32_6 : i32 to vector<128x2xi32>
    %16 = arith.cmpi slt, %13, %15 : vector<128x2xi32>
    %c0_i32 = arith.constant 0 : i32
    %17 = vector.broadcast %c0_i32 : i32 to vector<128x2xi32>
    %18 = arith.cmpi eq, %14, %17 : vector<128x2xi32>
    %19 = arith.xori %16, %18 : vector<128x2xi1>
    %cst_7 = arith.constant dense<true> : vector<128x2xi1>
    %20 = arith.xori %19, %cst_7 : vector<128x2xi1>
    %cst_8 = arith.constant 1.562500e-02 : f32
    %cst_9 = arith.constant 0.000000e+00 : f32
    %21 = vector.broadcast %cst_8 : f32 to vector<128x2xf32>
    %22 = vector.broadcast %cst_9 : f32 to vector<128x2xf32>
    %23 = arith.select %20, %21, %22 : vector<128x2xi1>, vector<128x2xf32>
    %24 = tpu.iota {dimensions = array<i32: 0>} : vector<2x128xi32>
    %25 = tpu.iota {dimensions = array<i32: 1>} : vector<2x128xi32>
    %c64_i32_10 = arith.constant 64 : i32
    %26 = vector.broadcast %c64_i32_10 : i32 to vector<2x128xi32>
    %27 = arith.cmpi slt, %25, %26 : vector<2x128xi32>
    %c1_i32 = arith.constant 1 : i32
    %28 = vector.broadcast %c1_i32 : i32 to vector<2x128xi32>
    %29 = arith.cmpi eq, %24, %28 : vector<2x128xi32>
    %30 = arith.xori %27, %29 : vector<2x128xi1>
    %cst_11 = arith.constant dense<true> : vector<2x128xi1>
    %31 = arith.xori %30, %cst_11 : vector<2x128xi1>
    %cst_12 = arith.constant 1.000000e+00 : f32
    %cst_13 = arith.constant 0.000000e+00 : f32
    %32 = vector.broadcast %cst_12 : f32 to vector<2x128xf32>
    %33 = vector.broadcast %cst_13 : f32 to vector<2x128xf32>
    %34 = arith.select %31, %32, %33 : vector<2x128xi1>, vector<2x128xf32>
    %c64_i32_14 = arith.constant 64 : i32
    %35 = vector.broadcast %c64_i32_14 : i32 to vector<2x128xi32>
    %36 = arith.cmpi slt, %25, %35 : vector<2x128xi32>
    %c0_i32_15 = arith.constant 0 : i32
    %37 = vector.broadcast %c0_i32_15 : i32 to vector<2x128xi32>
    %38 = arith.cmpi eq, %24, %37 : vector<2x128xi32>
    %39 = arith.xori %36, %38 : vector<2x128xi1>
    %cst_16 = arith.constant dense<true> : vector<2x128xi1>
    %40 = arith.xori %39, %cst_16 : vector<2x128xi1>
    %cst_17 = arith.constant 1.000000e+00 : f32
    %cst_18 = arith.constant 0.000000e+00 : f32
    %41 = vector.broadcast %cst_17 : f32 to vector<2x128xf32>
    %42 = vector.broadcast %cst_18 : f32 to vector<2x128xf32>
    %43 = arith.select %40, %41, %42 : vector<2x128xi1>, vector<2x128xf32>
    %cst_19 = arith.constant dense<0.000000e+00> : vector<32x2xf32>
    %44 = tpu.matmul %5, %23, %cst_19 {dimension_numbers = #tpu.dot_dimension_numbers<[1], [0], [0], [1], [0, 0, 1, 1], [], []>} : vector<32x128xf32>, vector<128x2xf32>, vector<32x2xf32> -> vector<32x2xf32>
    %c0_20 = arith.constant 0 : index
    %c0_21 = arith.constant 0 : index
    %45 = vector.load %arg3[%c0_20, %c0_21] : memref<10x32xf32, #tpu.memory_space<vmem>>, vector<10x32xf32>
    %46 = vector.extract_strided_slice %44 {offsets = [0, 0], sizes = [32, 1], strides = [1, 1]} : vector<32x2xf32> to vector<32x1xf32>
    %cst_22 = arith.constant dense<0.000000e+00> : vector<10x1xf32>
    %47 = tpu.matmul %45, %46, %cst_22 {dimension_numbers = #tpu.dot_dimension_numbers<[1], [0], [0], [1], [0, 0, 1, 1], [], []>} : vector<10x32xf32>, vector<32x1xf32>, vector<10x1xf32> -> vector<10x1xf32>
    %c0_23 = arith.constant 0 : index
    %c0_24 = arith.constant 0 : index
    %48 = vector.load %arg4[%c0_23, %c0_24] : memref<10x1xf32, #tpu.memory_space<vmem>>, vector<10x1xf32>
    %49 = arith.addf %47, %48 : vector<10x1xf32>
    %c0_25 = arith.constant 0 : index
    %c0_26 = arith.constant 0 : index
    %c0_27 = arith.constant 0 : index
    %50 = vector.load %arg5[%c0_25, %c0_26, %c0_27] : memref<1x10x1xf32, #tpu.memory_space<vmem>>, vector<1x10x1xf32>
    %51 = vector.shape_cast %50 : vector<1x10x1xf32> to vector<10x1xf32>
    %52 = vector.shape_cast %49 : vector<10x1xf32> to vector<1x10x1xf32>
    tpu.vector_store %arg5[%c0_25, %c0_26, %c0_27], %52 {strides = array<i32>} : memref<1x10x1xf32, #tpu.memory_space<vmem>>, vector<1x10x1xf32>,
    %cst_28 = arith.constant 3.125000e-02 : f32
    %53 = vector.broadcast %cst_28 : f32 to vector<1x32xf32>
    %cst_29 = arith.constant 1.000000e+00 : f32
    %54 = vector.broadcast %cst_29 : f32 to vector<1x32xf32>
    %cst_30 = arith.constant dense<0.000000e+00> : vector<1x128xf32>
    %55 = tpu.matmul %53, %5, %cst_30 {dimension_numbers = #tpu.dot_dimension_numbers<[1], [0], [0], [1], [0, 0, 1, 1], [], []>} : vector<1x32xf32>, vector<32x128xf32>, vector<1x128xf32> -> vector<1x128xf32>
    %56 = vector.broadcast %55 : vector<1x128xf32> to vector<32x128xf32>
    %57 = arith.subf %5, %56 : vector<32x128xf32>
    %58 = arith.mulf %57, %57 : vector<32x128xf32>
    %cst_31 = arith.constant dense<0.000000e+00> : vector<1x128xf32>
    %59 = tpu.matmul %54, %58, %cst_31 {dimension_numbers = #tpu.dot_dimension_numbers<[1], [0], [0], [1], [0, 0, 1, 1], [], []>} : vector<1x32xf32>, vector<32x128xf32>, vector<1x128xf32> -> vector<1x128xf32>
    %cst_32 = arith.constant 1.000000e-16 : f32
    %60 = vector.broadcast %cst_32 : f32 to vector<1x128xf32>
    %61 = arith.maximumf %59, %60 : vector<1x128xf32>
    %62 = math.rsqrt %61 : vector<1x128xf32>
    %cst_33 = arith.constant dense<0.000000e+00> : vector<32x128xf32>
    %63 = tpu.matmul %44, %34, %cst_33 {dimension_numbers = #tpu.dot_dimension_numbers<[1], [0], [0], [1], [0, 0, 1, 1], [], []>} : vector<32x2xf32>, vector<2x128xf32>, vector<32x128xf32> -> vector<32x128xf32>
    %64 = arith.mulf %5, %63 : vector<32x128xf32>
    %cst_34 = arith.constant dense<0.000000e+00> : vector<1x128xf32>
    %65 = tpu.matmul %54, %64, %cst_34 {dimension_numbers = #tpu.dot_dimension_numbers<[1], [0], [0], [1], [0, 0, 1, 1], [], []>} : vector<1x32xf32>, vector<32x128xf32>, vector<1x128xf32> -> vector<1x128xf32>
    %cst_35 = arith.constant 0.000000e+00 : f32
    %66 = vector.broadcast %cst_35 : f32 to vector<1x128xf32>
    %67 = arith.maximumf %65, %66 : vector<1x128xf32>
    %cst_36 = arith.constant 1.000000e-03 : f32
    %68 = vector.broadcast %cst_36 : f32 to vector<1x128xf32>
    %69 = arith.addf %67, %68 : vector<1x128xf32>
    %70 = vector.broadcast %62 : vector<1x128xf32> to vector<32x128xf32>
    %71 = arith.mulf %57, %70 : vector<32x128xf32>
    %72 = arith.truncf %71 : vector<32x128xf32> to vector<32x128xbf16>
    %73 = vector.broadcast %69 : vector<1x128xf32> to vector<2x128xf32>
    %74 = arith.mulf %73, %43 : vector<2x128xf32>
    %75 = arith.truncf %74 : vector<2x128xf32> to vector<2x128xbf16>
    %cst_37 = arith.constant dense<0.000000e+00> : vector<32x2xf32>
    %76 = tpu.matmul %72, %75, %cst_37 {dimension_numbers = #tpu.dot_dimension_numbers<[1], [1], [0], [0], [0, 0, 1, 0], [], []>} : vector<32x128xbf16>, vector<2x128xbf16>, vector<32x2xf32> -> vector<32x2xf32>
    %77 = vector.extract_strided_slice %76 {offsets = [0, 0], sizes = [32, 1], strides = [1, 1]} : vector<32x2xf32> to vector<32x1xf32>
    %78 = vector.extract_strided_slice %76 {offsets = [0, 1], sizes = [32, 1], strides = [1, 1]} : vector<32x2xf32> to vector<32x1xf32>
    %79 = arith.mulf %77, %78 : vector<32x1xf32>
    %cst_38 = arith.constant dense<0.000000e+00> : vector<1xf32>
    %80 = vector.multi_reduction <add>, %79, %cst_38 [0] : vector<32x1xf32> to vector<1xf32>
    %81 = vector.shape_cast %80 : vector<1xf32> to vector<1x1xf32>
    %82 = arith.mulf %69, %10 : vector<1x128xf32>
    %cst_39 = arith.constant dense<0.000000e+00> : vector<1xf32>
    %83 = vector.multi_reduction <add>, %82, %cst_39 [1] : vector<1x128xf32> to vector<1xf32>
    %84 = vector.shape_cast %83 : vector<1xf32> to vector<1x1xf32>
    %85 = arith.mulf %69, %12 : vector<1x128xf32>
    %cst_40 = arith.constant dense<0.000000e+00> : vector<1xf32>
    %86 = vector.multi_reduction <add>, %85, %cst_40 [1] : vector<1x128xf32> to vector<1xf32>
    %87 = vector.shape_cast %86 : vector<1xf32> to vector<1x1xf32>
    %88 = arith.mulf %84, %87 : vector<1x1xf32>
    %89 = arith.divf %81, %88 : vector<1x1xf32>
    %cst_41 = arith.constant 0.1953125 : f32
    %90 = vector.broadcast %cst_41 : f32 to vector<1x1xf32>
    %91 = arith.mulf %89, %90 : vector<1x1xf32>
    %c0_42 = arith.constant 0 : index
    %c0_43 = arith.constant 0 : index
    %c0_44 = arith.constant 0 : index
    %92 = vector.load %arg6[%c0_42, %c0_43, %c0_44] : memref<1x1x1xf32, #tpu.memory_space<vmem>>, vector<1x1x1xf32>
    %93 = vector.shape_cast %92 : vector<1x1x1xf32> to vector<1x1xf32>
    %94 = vector.shape_cast %91 : vector<1x1xf32> to vector<1x1x1xf32>
    tpu.vector_store %arg6[%c0_42, %c0_43, %c0_44], %94 {strides = array<i32>} : memref<1x1x1xf32, #tpu.memory_space<vmem>>, vector<1x1x1xf32>,
    return
  }
  func.func @transform_0(%arg0: i32) -> (i32, i32, i32) {
    %c0_i32 = arith.constant 0 : i32
    %c0_i32_0 = arith.constant 0 : i32
    %c0_i32_1 = arith.constant 0 : i32
    return %arg0, %c0_i32, %c0_i32_0 : i32, i32, i32
  }
  func.func @transform_1(%arg0: i32) -> (i32, i32) {
    %c0_i32 = arith.constant 0 : i32
    %c0_i32_0 = arith.constant 0 : i32
    %c0_i32_1 = arith.constant 0 : i32
    return %c0_i32, %c0_i32_0 : i32, i32
  }
  func.func @transform_2(%arg0: i32) -> (i32, i32) {
    %c0_i32 = arith.constant 0 : i32
    %c0_i32_0 = arith.constant 0 : i32
    %c0_i32_1 = arith.constant 0 : i32
    return %c0_i32, %c0_i32_0 : i32, i32
  }
  func.func @transform_3(%arg0: i32) -> (i32, i32) {
    %c0_i32 = arith.constant 0 : i32
    %c0_i32_0 = arith.constant 0 : i32
    %c0_i32_1 = arith.constant 0 : i32
    return %c0_i32, %c0_i32_0 : i32, i32
  }
  func.func @transform_4(%arg0: i32) -> (i32, i32, i32) {
    %c0_i32 = arith.constant 0 : i32
    %c0_i32_0 = arith.constant 0 : i32
    %c0_i32_1 = arith.constant 0 : i32
    return %arg0, %c0_i32, %c0_i32_0 : i32, i32, i32
  }
  func.func @transform_5(%arg0: i32) -> (i32, i32, i32) {
    %c0_i32 = arith.constant 0 : i32
    %c0_i32_0 = arith.constant 0 : i32
    %c0_i32_1 = arith.constant 0 : i32
    return %arg0, %c0_i32, %c0_i32_0 : i32, i32, i32
  }
}

</mosaic_0001>

<bundles_post_ra>
// kernel: tpu_custom_call.1
= control target key start
LH: loop header
LB: loop body
LE: loop exit
PB: predicated region body
PF: predicated region fallthrough
CT: control target
= control target key end

     0   :  { %s1435_s18 = smov 0   ;;  %s1585_s0 = inlined_call_operand.vmem [shape: bf16[2,4,128], index: 0, kind: input, shape index: {}]   ;;  %s1586_s1 = inlined_call_operand.vmem [shape: bf16[32,4], index: 1, kind: input, shape index: {}]   ;;  %s1587_s2 = inlined_call_operand.vmem [shape: f32[10,32], index: 2, kind: input, shape index: {}]   ;;  %s1588_s3 = inlined_call_operand.vmem [shape: f32[10,1], index: 3, kind: input, shape index: {}]   ;;  %s1589_s4 = inlined_call_operand.vmem [shape: f32[2,10,1], index: 4, kind: output, shape index: {0}]   ;;  %s1590_s5 = inlined_call_operand.vmem [shape: f32[2,1,1], index: 5, kind: output, shape index: {1}]  }
   0x1 LB: > { %s1112_s19 = sadd.s32 4294967295, %s1395_s18   ;;  %p1116_p0 = scmp.ge.s32.totalorder %s1395_s18, 1  ;;  %s1395_s18 = sphi %s1435_s18, %s16_s18  }
   0x2   : > { %p189_p1 = scmp.lt.s32.totalorder %s1395_s18, 3 }
   0x4   : > { %p190_p2 = pnand %p1116_p0, %p189_p1 }
   0x5   : > { %p219_p3 = scmp.lt.s32.totalorder (!%p190_p2), %s1112_s19, 1  ;;  %v311_v0 = vlaneseq (!%p190_p2)  ;;  %v1383_v1 = vld [vmem:[%s1586_s1] sm:$0xff] (!%p190_p2)   ;;  %vm247_vm0 = vcmask (!%p190_p2), 31744   ;;  %vm254_vm1 = vcmask (!%p190_p2), 1041408   ;;  %vm1397_vm3 = vmmov (!%p190_p2), 1   ;;  %v1384_v5 = vld [vmem:[%s1586_s1 + $0x8] sm:$0xff] (!%p190_p2)  }
   0x6   : > { %193 = sbr.rel (%p190_p2) target bundleno = 1512 (0x5e8), region = 36  ;;  %1208 = vmatprep.mubr.msk.bf16.mxu0 (!%p190_p2), %vm247_vm0, %v1383_v1  ;;  %v1398_v6 = vmov (!%p190_p2), 0.015625|0.015625   ;;  %v492_v15 = vld [vmem:[%s1587_s2] sm:$0xff] (!%p190_p2)  ;;  %vm496_vm9 = vcmask (!%p190_p2), 261120   ;;  %v1399_v23 = vmov (!%p190_p2), 0.0|0.0  }
   0x7   : > { %v1449_v2 = vand.u32 (!%p190_p2), 127, %v311_v0  ;;  %v493_v22 = vld [vmem:[%s1587_s2 + $0x8] sm:$0x3] (!%p190_p2)  ;;  %vm1400_vm10 = vmmov (!%p190_p2), 0   ;;  %v1401_v25 = vmov (!%p190_p2), 0.0   ;;  %v1402_v27 = vmov (!%p190_p2), 0.03125  }
   0x8   : > { %v495_v28 = vld [vmem:[%s1588_s3 + $0x8] sm:$0x3] (!%p190_p2)  ;;  %v494_v29 = vld [vmem:[%s1588_s3] sm:$0xff] (!%p190_p2)  ;;  %vm580_vm11 = vcmask (!%p190_p2), 1024   ;;  %vm578_vm12 = vcmask (!%p190_p2), 7168   ;;  %v318_v33 = vshrl.u32 (!%p190_p2), %v311_v0, 7 }
   0x9   : > { %vm350_vm2 = vcmp.eq.s32.totalorder (!%p190_p2), %v1449_v2, 0  ;;  %vm313_vm13 = vcmp.lt.s32.totalorder (!%p190_p2), %v1449_v2, 64  ;;  %v1403_v50 = vmov (!%p190_p2), 1.0   ;;  %s1404_s15 = smov (!%p190_p2), 127  }
   0xa   : > { %vm351_vm4 = vmxor (!%p190_p2), %vm1397_vm3, %vm350_vm2  ;;  %v1526_v35 = vsub.s32 (!%p190_p2), 0, %v318_v33  ;;  %vm399_vm14 = vcmp.eq.s32.totalorder (!%p190_p2), %v318_v33, 1 }
   0xb   : > { %vm367_vm5 = vmxor (!%p190_p2), %vm351_vm4, %vm1397_vm3 }
   0xc   : > { %vm1308_vm6 = vmpackc.low (!%p190_p2), %vm367_vm5, %vm367_vm5 }
   0xd   : > { %s1592_s19 = smov (!%p219_p3, %s1112_s19), 1  ;;  %1309 = vmatprep.subr.msk.bf16.mxu1 %vm1308_vm6, %v1398_v6  ;;  %vm375_vm7 = vmxor %vm350_vm2, %vm1397_vm3  ;;  %vm742_vm2 = vcmask 15360  }
   0xe   : > { %s1117_s22 = sshll.u32 %s1592_s19, 1  ;;  %1311 = vmatpush3.bf16.msk.msra.mxu1 %vm1308_vm6, %v1398_v6  ;;  %vm1324_vm8 = vmpackc.low %vm375_vm7, %vm375_vm7  ;;  %s1153_s7 = sshll.u32 %s1592_s19, 4 }
   0xf   : > { %s222_s25 = scalar_lea.vmem %s1585_s0, %s1117_s22  ;;  %1313 = vmatprep.subr.msk.bf16.mxu1 %vm1308_vm6, %v1398_v6  ;;  %s227_s14 = scalar_lea.vmem %s1589_s4, %s1153_s7  ;;  %vm400_vm15 = vmxor %vm313_vm13, %vm399_vm14 }
  0x10   : > { %v232_v3 = vld [vmem:[%s222_s25] sm:$0x3]  ;;  %s230_s20 = scalar_lea.vmem %s1590_s5, %s1592_s19 }
  0x11   : > { %1366 = vmatprep.subr.msk.bf16.mxu0 %vm254_vm1, %v232_v3  ;;  %v256_v4 = vsel %vm254_vm1, %v232_v3, 0 }
  0x12   : > { %1207 = vmatpush3.bf16.msra.mxu0 %v256_v4  ;;  %1315 = vmatpush3.bf16.msk.msra.mxu1 %vm1308_vm6, %v1398_v6 }
  0x13   : > { %1317 = vmatprep.subr.msk.bf16.mxu1 %vm1308_vm6, %v1398_v6 }
  0x15   : > { %1209 = vmatmul.mubr.msk.bf16.vlgmr.msra.gmra.mrb[0].mxu0 %vm247_vm0, %v1384_v5  ;;  %vm401_vm0 = vmxor %vm400_vm15, %vm1397_vm3 }
  0x16   : > { %1319 = vmatpush3.bf16.msk.msra.mxu1 %vm1308_vm6, %v1398_v6  ;;  %1258 = vmatprep.mubr.msk.f32.mxu0 %vm496_vm9, %v492_v15  ;;  %v402_v49 = vsel %vm401_vm0, 1.0, %v1401_v25 }
  0x17   : > { %1321 = vmatprep.subr.msk.bf16.mxu1 %vm1308_vm6, %v1398_v6 }
  0x1a   : > { %1323 = vmatpush3.bf16.msk.msra.mxu1 %vm1308_vm6, %v1398_v6  ;;  %vm1018_vm6 = vcmask 1040384  }
  0x1b   : > { %1325 = vmatprep.subr.msk.bf16.mxu1 %vm1324_vm8, %v1398_v6 }
  0x1e   : > { %1327 = vmatpush3.bf16.msk.msra.mxu1 %vm1324_vm8, %v1398_v6 }
  0x1f   : > { %1329 = vmatprep.subr.msk.bf16.mxu1 %vm1324_vm8, %v1398_v6 }
  0x22   : > { %1331 = vmatpush3.bf16.msk.msra.mxu1 %vm1324_vm8, %v1398_v6 }
  0x23   : > { %1333 = vmatprep.subr.msk.bf16.mxu1 %vm1324_vm8, %v1398_v6 }
  0x26   : > { %1335 = vmatpush3.bf16.msk.msra.mxu1 %vm1324_vm8, %v1398_v6 }
  0x27   : > { %1337 = vmatprep.subr.msk.bf16.mxu1 %vm1324_vm8, %v1398_v6 }
  0x2a   : > { %1339 = vmatpush3.bf16.msk.msra.mxu1 %vm1324_vm8, %v1398_v6 }
  0xe8   : > { %v1210_v7 = vpop.f32.mrb[0].mxu0 }
  0xe9   : > { %v292_v8 = vpop.f32.mrb[1].mxu0  ;;  %v1475_v13 = vmax.f32 %v1210_v7, 0.0  ;;  %v1124_v7 = vsel %vm313_vm13, 1.0, %v1401_v25 }
  0xea   : > { %v1470_v9 = vmax.f32 %v292_v8, 0.0  ;;  %v1211_v10 = vpop.f32.mrb[2].mxu0 }
  0xeb   : > { %v295_v11 = vpop.f32.mrb[3].mxu0  ;;  %v1479_v14 = vmax.f32 %v1211_v10, 0.0 }
  0xec   : > { %v1472_v12 = vmax.f32 %v295_v11, 0.0  ;;  %1244 = vmatprep.mubr.f32.mxu1 %v1470_v9  ;;  %v316_v11 = vsub.f32 1.0, %v1124_v7 }
  0xed   : > { %v1352_v26 = vpack.c.bf16 %v1479_v14, %v1475_v13 }
  0xee   : > { %1245 = vmatmul.mubr.f32.vlgmr.msra.gmra.mrb[0].mxu1 %v1472_v12  ;;  %v1349_v24 = vpack.c.bf16 %v1472_v12, %v1470_v9 }
  0xef   : > { %1247 = vmatprep.mubr.f32.mxu1 %v1475_v13 }
  0xf2   : > { %1248 = vmatmul.mubr.f32.gmra.mrb[2].mxu1 %v1479_v14 }
 0x1c1   : > { %v1486_v16 = vpop.f32.mrb[0].mxu1 }
 0x1c2   : > { %v1488_v17 = vpop.f32.mrb[1].mxu1 }
 0x1c3   : > { %v1340_v18 = vpack.c.bf16 %v1486_v16, %v1488_v17 }
 0x1c5   : > { %v1492_v19 = vpop.f32.mrb[2].mxu1  ;;  %1341 = vmatprep.subr.bf16.mxu0 %v1340_v18 }
 0x1c6   : > { %v1494_v20 = vpop.f32.mrb[3].mxu1  ;;  %1343 = vmatpush3.bf16.msra.mxu0 %v1340_v18 }
 0x1c7   : > { %v1344_v21 = vpack.c.bf16 %v1492_v19, %v1494_v20 }
 0x1c9   : > { %1345 = vmatprep.subr.bf16.mxu0 %v1344_v21 }
 0x1ca   : > { %1347 = vmatpush3.bf16.msra.mxu0 %v1344_v21 }
 0x1cb   : > { %1348 = vmatprep.subr.bf16.mxu0 %v1399_v23 }
 0x1cd   : > { %1259 = vmatmul.mubr.msk.f32.vlgmr.msra.gmra.mrb[4].mxu0 %vm496_vm9, %v493_v22 }
 0x1ce   : > { %1350 = vmatpush3.bf16.msra.mxu0 %v1349_v24  ;;  %1269 = vmatprep.mubr.msk.f32.mxu0 %vm1400_vm10, %v1401_v25 }
 0x1cf   : > { %1351 = vmatprep.subr.bf16.mxu0 %v1399_v23 }
 0x1d2   : > { %1353 = vmatpush3.bf16.msra.mxu0 %v1352_v26 }
 0x1d3   : > { %1354 = vmatprep.subr.bf16.mxu0 %v1399_v23 }
 0x1d5   : > { %1270 = vmatmul.mubr.msk.f32.vlgmr.msra.gmra.mrb[6].mxu0 %vm496_vm9, %v1402_v27 }
 0x1d6   : > { %1280 = vmatprep.mubr.msk.f32.mxu0 %vm1400_vm10, %v1401_v25 }
 0x2a0   : > { %v1260_v30 = vpop.f32.mrb[4].mxu0 }
 0x2a1   : > { %v575_v31 = vadd.f32 %v1260_v30, %v495_v28  ;;  %v569_v32 = vpop.f32.mrb[5].mxu0 }
 0x2a2   : > { %v570_v34 = vadd.f32 %v569_v32, %v494_v29 }
 0x2a3   : > { %581 = vst.msk [vmem:[%s227_s14 + $0x8] sm:$0x3] %vm580_vm11, %v575_v31 }
 0x2a4   : > { %579 = vst.msk [vmem:[%s227_s14] sm:$0xff] %vm578_vm12, %v570_v34 }
 0x2a8   : > { %v651_v36 = vpop.f32.mrb[6].mxu0 }
 0x2a9   : > { %v658_v37 = vrot.slane %v651_v36, %v1526_v35  ;;  %v1271_v38 = vpop.f32.mrb[7].mxu0 }
 0x2ab   : > { %v659_v39 = vsub.f32 %v1470_v9, %v658_v37  ;;  %v660_v40 = vsub.f32 %v1472_v12, %v658_v37  ;;  %v1533_v41 = vsub.f32 %v1475_v13, %v658_v37  ;;  %v1536_v42 = vsub.f32 %v1479_v14, %v658_v37 }
 0x2ad   : > { %v663_v43 = vmul.f32 %v659_v39, %v659_v39  ;;  %v664_v44 = vmul.f32 %v660_v40, %v660_v40  ;;  %v665_v46 = vmul.f32 %v1533_v41, %v1533_v41  ;;  %v666_v47 = vmul.f32 %v1536_v42, %v1536_v42 }
 0x2af   : > { %v1355_v45 = vpack.c.bf16 %v664_v44, %v663_v43  ;;  %v1358_v48 = vpack.c.bf16 %v666_v47, %v665_v46 }
 0x2b1   : > { %1356 = vmatpush3.bf16.msra.mxu0 %v1355_v45 }
 0x2b2   : > { %1357 = vmatprep.subr.bf16.mxu0 %v1399_v23 }
 0x2b5   : > { %1359 = vmatpush3.bf16.msra.mxu0 %v1358_v48 }
 0x2b6   : > { %1283 = vmatprep.subr.msk.mxu0 %vm254_vm1, %v402_v49 }
 0x2b8   : > { %1281 = vmatmul.mubr.msk.f32.vlgmr.msra.gmra.mrb[8].mxu0 %vm496_vm9, %v1403_v50 }
 0x2b9   : > { %1284 = vmatpush3.msk.msra.mxu0 %vm254_vm1, %v402_v49  ;;  %1285 = vmatprep.mubr.msk.f32.mxu0 %vm742_vm2, %v1488_v17  ;;  %vm403_vm1 = vcmp.eq.s32.totalorder %v318_v33, 0 }
 0x2ba   : > { %1360 = vmatprep.subr.bf16.mxu0 %v1399_v23  ;;  %vm404_vm4 = vmxor %vm313_vm13, %vm403_vm1 }
 0x2bb   : > { %vm405_vm5 = vmxor %vm404_vm4, %vm1397_vm3  ;;  %vm1030_vm3 = vcmask 0  }
 0x2bc   : > { %1286 = vmatmul.mubr.msk.f32.vlgmr.msra.gmra.mrb[10].mxu0 %vm742_vm2, %v1486_v16 }
 0x2bd   : > { %1288 = vmatprep.mubr.msk.f32.mxu0 %vm742_vm2, %v1494_v20 }
 0x2c0   : > { %1289 = vmatmul.mubr.msk.f32.gmra.mrb[12].mxu0 %vm742_vm2, %v1492_v19 }
 0x2c1   : > { %1299 = vmatprep.mubr.msk.f32.mxu0 %vm1400_vm10, %v1401_v25 }
 0x38b   : > { %v736_v51 = vpop.f32.mrb[8].mxu0 }
 0x38c   : > { %v740_v52 = vmax.f32 %v736_v51, 1e-16  ;;  %v1282_v53 = vpop.f32.mrb[9].mxu0 }
 0x38e   : > { %1385 = vrsqrt.f32 %v740_v52 }
 0x38f   : > { %v1287_v54 = vpop.f32.mrb[10].mxu0 }
 0x390   : > { %v844_v55 = vmul.f32 %v1287_v54, %v1472_v12  ;;  %v824_v56 = vpop.f32.mrb[11].mxu0  ;;  %v406_v12 = vsel %vm405_vm5, 1.0, %v1401_v25 }
 0x391   : > { %v843_v57 = vmul.f32 %v824_v56, %v1470_v9 }
 0x393   : > { %v1361_v58 = vpack.c.bf16 %v844_v55, %v843_v57  ;;  %v1290_v59 = vpop.f32.mrb[12].mxu0 }
 0x394   : > { %v846_v60 = vmul.f32 %v1290_v59, %v1479_v14  ;;  %v834_v61 = vpop.f32.mrb[13].mxu0 }
 0x395   : > { %v845_v62 = vmul.f32 %v834_v61, %v1475_v13  ;;  %1362 = vmatpush3.bf16.msra.mxu0 %v1361_v58 }
 0x396   : > { %1363 = vmatprep.subr.bf16.mxu0 %v1399_v23 }
 0x397   : > { %v1364_v63 = vpack.c.bf16 %v846_v60, %v845_v62 }
 0x398   : > { %v1386_v0 = vpop.eup %1385 }
 0x399   : > { %v922_v1 = vrot.slane %v1386_v0, %v1526_v35  ;;  %1365 = vmatpush3.bf16.msra.mxu0 %v1364_v63 }
 0x39b   : > { %v923_v3 = vmul.f32 %v922_v1, %v659_v39  ;;  %v924_v4 = vmul.f32 %v922_v1, %v660_v40  ;;  %v925_v19 = vmul.f32 %v922_v1, %v1533_v41  ;;  %v926_v20 = vmul.f32 %v922_v1, %v1536_v42 }
 0x39c   : > { %1300 = vmatmul.mubr.msk.f32.vlgmr.msra.gmra.mrb[14].mxu0 %vm496_vm9, %v1403_v50 }
 0x39d   : > { %v927_v5 = vpack.c.bf16 %v924_v4, %v923_v3  ;;  %v928_v21 = vpack.c.bf16 %v926_v20, %v925_v19 }
 0x39f   : > { %1304 = vmatprep.mubr.bf16.mxu1 %v927_v5 }
 0x46f   : > { %v913_v6 = vpop.f32.mrb[14].mxu0 }
 0x470   : > { %v917_v8 = vmax.f32 %v913_v6, 0.0  ;;  %v1301_v9 = vpop.f32.mrb[15].mxu0 }
 0x472   : > { %v918_v10 = vadd.f32 0.001, %v917_v8 }
 0x474   : > { %v932_v13 = vrot.slane %v918_v10, %v1526_v35  ;;  %v1017_v14 = vmul.f32 %v1124_v7, %v918_v10  ;;  %v1022_v17 = vmul.f32 %v918_v10, %v316_v11 }
 0x476   : > { %v1019_v15 = vsel %vm1018_vm6, %v1017_v14, 0.0  ;;  %v933_v16 = vmul.f32 %v932_v13, %v406_v12  ;;  %v1023_v2 = vsel %vm1018_vm6, %v1022_v17, 0.0 }
 0x477   : > { %1020 = vadd.xlane.f32.xlu0 %v1019_v15 }
 0x478   : > { %v934_v18 = vpack.c.bf16 %v933_v16, %v933_v16 }
 0x47a   : > { %1302 = vmatprep.subr.bf16.mxu1 %v934_v18 }
 0x47b   : > { %1024 = vadd.xlane.f32.xlu0 %v1023_v2  ;;  %1303 = vmatpush3.bf16.xpose.msra.mxu1 %v934_v18 }
 0x482   : > { %1305 = vmatmul.mubr.bf16.vlgmr.msra.gmra.mrb[4].mxu1 %v928_v21 }
 0x504   : > { %v1021_v26 = vpop.xlane.xlu0 %1020 }
 0x508   : > { %v1025_v27 = vpop.xlane.xlu0 %1024 }
 0x509   : > { %v1026_v41 = vmul.f32 %v1025_v27, %v1021_v26 }
 0x50b   : > { %1387 = vrcp.f32 %v1026_v41 }
 0x515   : > { %v1388_v50 = vpop.eup %1387 }
 0x555   : > { %v1306_v22 = vpop.f32.mrb[4].mxu1 }
 0x556   : > { %992 = vrot.lane.b32.xlu0 %v1306_v22, %s1404_s15  ;;  %v969_v23 = vpop.f32.mrb[5].mxu1 }
 0x557   : > { %988 = vrot.lane.b32.xlu1 %v969_v23, %s1404_s15  ;;  %v1307_v24 = vpop.f32.mrb[6].mxu1 }
 0x558   : > { %v972_v25 = vpop.f32.mrb[7].mxu1 }
 0x55b   : > { %990 = vrot.lane.b32.xlu1 %v972_v25, %s1404_s15 }
 0x55f   : > { %994 = vrot.lane.b32.xlu1 %v1307_v24, %s1404_s15 }
 0x5c8   : > { %v993_v29 = vpop.permute.xlu0 %992 }
 0x5c9   : > { %v989_v28 = vpop.permute.xlu1 %988  ;;  %v1002_v32 = vmul.f32 %v1306_v22, %v993_v29 }
 0x5ca   : > { %v1000_v30 = vmul.f32 %v989_v28, %v969_v23 }
 0x5cb   : > { %v1007_v38 = vsel %vm578_vm12, %v1002_v32, 0.0 }
 0x5cc   : > { %v1004_v34 = vsel %vm578_vm12, %v1000_v30, 0.0 }
 0x5cd   : > { %v991_v31 = vpop.permute.xlu1 %990 }
 0x5ce   : > { %v1001_v33 = vmul.f32 %v991_v31, %v972_v25 }
 0x5d0   : > { %v1005_v35 = vsel %vm578_vm12, %v1001_v33, 0.0 }
 0x5d1   : > { %v1006_v36 = vadd.f32 %v1005_v35, %v1004_v34  ;;  %v995_v37 = vpop.permute.xlu1 %994 }
 0x5d2   : > { %v1003_v39 = vmul.f32 %v1307_v24, %v995_v37 }
 0x5d3   : > { %v1008_v40 = vadd.f32 %v1007_v38, %v1006_v36 }
 0x5d4   : > { %v1009_v42 = vsel %vm578_vm12, %v1003_v39, 0.0 }
 0x5d5   : > { %v1010_v43 = vadd.f32 %v1009_v42, %v1008_v40 }
 0x5d7   : > { %v1011_v44 = vrot.slane %v1010_v43, 4 }
 0x5d9   : > { %v1012_v45 = vadd.f32 %v1011_v44, %v1010_v43 }
 0x5db   : > { %v1013_v46 = vrot.slane %v1012_v45, 2 }
 0x5dd   : > { %v1014_v47 = vadd.f32 %v1013_v46, %v1012_v45 }
 0x5df   : > { %v1015_v48 = vrot.slane %v1014_v47, 1 }
 0x5e1   : > { %v1016_v49 = vadd.f32 %v1015_v48, %v1014_v47 }
 0x5e3   : > { %v1028_v51 = vmul.f32 %v1388_v50, %v1016_v49 }
 0x5e5   : > { %v1029_v52 = vmul.f32 0.1953125, %v1028_v51 }
 0x5e7   : > { %1031 = vst.msk [vmem:[%s230_s20] sm:$0x1] %vm1030_vm3, %v1029_v52 }
 0x5e8 PF: > { %s16_s18 = sadd.s32 1, %s1395_s18  }
 0x5e9   : > { %p13_p4 = scmp.ge.s32.totalorder %s16_s18, 4  }
 0x5eb   :  { %15 = sbr.rel (!%p13_p4) target bundleno = 1 (0x1), region = 78 }

</bundles_post_ra>
